<compile_context>
chip_gen: v6e
topology: v6e:2x2x1
jax: 0.10.0
libtpu: 0.0.40
codegen_flags: <defaults>
</compile_context>

<pallas_src>
import math

import jax
import jax.numpy as jnp
from jax import lax
from jax.experimental import pallas as pl
from jax.experimental.pallas import tpu as pltpu


def _round_up(x, m):
    return ((x + m - 1) // m) * m


# --------------------------------------------------------------------------------------
# Pass 1: im2col matmul (conv) + per-tile BN partial sums
# --------------------------------------------------------------------------------------
def _matmul_stats_kernel(p_ref, w_ref, y_ref, stat_ref):
    """p_ref:    (TILE_M, Kd)  bf16  im2col patch rows for this tile
       w_ref:    (Kd, C)       bf16  flipped/transposed transpose-conv weight (padded)
       y_ref:    (TILE_M, C)   f32   conv output tile (lane-dense, C = 128-padded Cout)
       stat_ref: (1, 8, C)     f32   row 0 = per-channel sum, row 1 = sum of squares
    """
    acc = jnp.dot(p_ref[...], w_ref[...], preferred_element_type=jnp.float32)
    y_ref[...] = acc

    s = jnp.sum(acc, axis=0, keepdims=True)            # (1, C)
    ss = jnp.sum(acc * acc, axis=0, keepdims=True)     # (1, C)
    pad = jnp.zeros((6, acc.shape[1]), dtype=jnp.float32)
    stat_ref[0] = jnp.concatenate([s, ss, pad], axis=0)  # full (8, C) store


# --------------------------------------------------------------------------------------
# Pass 2: BatchNorm (precomputed mean / rstd) + ReLU
# --------------------------------------------------------------------------------------
def _bn_relu_kernel(y_ref, mean_ref, rstd_ref, o_ref):
    """y_ref: (TILE_M, C) f32, mean_ref/rstd_ref: (1, C) f32, o_ref: (TILE_M, C) f32."""
    y = y_ref[...]
    o_ref[...] = jnp.maximum((y - mean_ref[...]) * rstd_ref[...], 0.0)


# --------------------------------------------------------------------------------------
# Public wrapper (NCHW in / NCHW out, PyTorch ConvTranspose2d semantics)
# --------------------------------------------------------------------------------------
def transpose_conv_block_forward(x_nchw, weight_iokk, *, stride, padding,
                                 eps=1e-5, tile_m=256):
    """x_nchw:      (N, Cin, H, W) float32
       weight_iokk: (Cin, Cout, K, K) float32  (PyTorch ConvTranspose2d weight layout)
       returns      (N, Cout, Ho, Wo) float32 with Ho = (H-1)*stride - 2*padding + K
    """
    N, Cin, H, W = x_nchw.shape
    Cin_w, Cout, K, _ = weight_iokk.shape
    assert Cin_w == Cin
    s, p = int(stride), int(padding)
    assert p <= K - 1, "padding > kernel_size - 1 not supported by this kernel"
    Ho = (H - 1) * s - 2 * p + K
    Wo = (W - 1) * s - 2 * p + K

    # ---- glue: ConvTranspose2d == (dilate by stride, pad K-1-p, conv with flipped W) ----
    x_nhwc = jnp.transpose(x_nchw, (0, 2, 3, 1))                    # (N, H, W, Cin)
    Hd, Wd = (H - 1) * s + 1, (W - 1) * s + 1
    xd = jnp.zeros((N, Hd, Wd, Cin), x_nhwc.dtype).at[:, ::s, ::s, :].set(x_nhwc)
    pe = K - 1 - p
    xp = jnp.pad(xd, ((0, 0), (pe, pe), (pe, pe), (0, 0)))
    # w_conv[ky, kx, ci, co] = W[ci, co, K-1-ky, K-1-kx]
    w_conv = jnp.transpose(weight_iokk[:, :, ::-1, ::-1], (2, 3, 0, 1))  # (K,K,Cin,Cout)

    # ---- glue: im2col so the kernel does a single lane-dense matmul ----
    cols = [xp[:, ky:ky + Ho, kx:kx + Wo, :] for ky in range(K) for kx in range(K)]
    patches = jnp.concatenate(cols, axis=-1).reshape(N * Ho * Wo, K * K * Cin)
    wmat = w_conv.reshape(K * K * Cin, Cout)

    M = N * Ho * Wo
    Kd = K * K * Cin
    Kd_pad = _round_up(Kd, 128)          # lane-aligned contraction dim
    C_pad = _round_up(Cout, 128)         # lane-dense output channels (unmasked stores)
    tile_m = min(tile_m, _round_up(M, 8))
    M_pad = _round_up(M, tile_m)
    n_tiles = M_pad // tile_m

    # Zero padding is exact: padded rows/cols contribute 0 to the matmul and to the
    # BN sums (we divide by the real M below), and are sliced away at the end.
    patches_p = jnp.zeros((M_pad, Kd_pad), jnp.bfloat16)
    patches_p = patches_p.at[:M, :Kd].set(patches.astype(jnp.bfloat16))
    wmat_p = jnp.zeros((Kd_pad, C_pad), jnp.bfloat16)
    wmat_p = wmat_p.at[:Kd, :Cout].set(wmat.astype(jnp.bfloat16))

    # ---- pass 1: conv tiles + per-tile channel sums ----
    flops = 2 * M_pad * Kd_pad * C_pad
    bytes_accessed = (patches_p.size * 2 + wmat_p.size * 2
                      + M_pad * C_pad * 4 + n_tiles * 8 * C_pad * 4)
    y, stats = pl.pallas_call(
        _matmul_stats_kernel,
        out_shape=(jax.ShapeDtypeStruct((M_pad, C_pad), jnp.float32),
                   jax.ShapeDtypeStruct((n_tiles, 8, C_pad), jnp.float32)),
        grid=(n_tiles,),
        in_specs=[
            pl.BlockSpec((tile_m, Kd_pad), lambda i: (i, 0)),
            pl.BlockSpec((Kd_pad, C_pad), lambda i: (0, 0)),
        ],
        out_specs=(
            pl.BlockSpec((tile_m, C_pad), lambda i: (i, 0)),
            pl.BlockSpec((1, 8, C_pad), lambda i: (i, 0, 0)),
        ),
        compiler_params=pltpu.CompilerParams(
            dimension_semantics=("parallel",)),
        cost_estimate=pl.CostEstimate(flops=int(flops), transcendentals=0,
                                      bytes_accessed=int(bytes_accessed)),
    )(patches_p, wmat_p)

    # ---- glue: combine tiny per-tile partials into mean / rstd (128-wide vectors) ----
    ch_sum = jnp.sum(stats[:, 0, :], axis=0)                         # (C_pad,)
    ch_sumsq = jnp.sum(stats[:, 1, :], axis=0)                       # (C_pad,)
    mean = (ch_sum / M).reshape(1, C_pad)
    var = jnp.maximum(ch_sumsq / M - (ch_sum / M) ** 2, 0.0)         # biased (train-mode)
    rstd = lax.rsqrt(var + eps).reshape(1, C_pad)

    # ---- pass 2: normalize + ReLU ----
    out = pl.pallas_call(
        _bn_relu_kernel,
        out_shape=jax.ShapeDtypeStruct((M_pad, C_pad), jnp.float32),
        grid=(n_tiles,),
        in_specs=[
            pl.BlockSpec((tile_m, C_pad), lambda i: (i, 0)),
            pl.BlockSpec((1, C_pad), lambda i: (0, 0)),
            pl.BlockSpec((1, C_pad), lambda i: (0, 0)),
        ],
        out_specs=pl.BlockSpec((tile_m, C_pad), lambda i: (i, 0)),
        compiler_params=pltpu.CompilerParams(
            dimension_semantics=("parallel",)),
    )(y, mean, rstd)

    out = out[:M, :Cout].reshape(N, Ho, Wo, Cout)
    return jnp.transpose(out, (0, 3, 1, 2))                          # back to NCHW


# --------------------------------------------------------------------------------------
# Parameter init matching TransposeConvBlock.__init__
# --------------------------------------------------------------------------------------
def init_transpose_conv_block_params(key, in_channel_dim, out_channel_dim, kernel_dim):
    """ConvTranspose2d weight shape (Cin, Cout, K, K), kaiming_normal_(a=0.0001).
       (PyTorch fan_in for ConvTranspose2d weight = Cout * K * K.)
       The conv bias is dropped: BatchNorm2d(affine=False) cancels it exactly.
    """
    fan_in = out_channel_dim * kernel_dim * kernel_dim
    a = 0.0001
    gain = math.sqrt(2.0 / (1.0 + a * a))
    std = gain / math.sqrt(fan_in)
    weight = std * jax.random.normal(
        key, (in_channel_dim, out_channel_dim, kernel_dim, kernel_dim),
        dtype=jnp.float32)
    return weight


if __name__ == "__main__":
    key = jax.random.PRNGKey(0)
    k_x, k_w = jax.random.split(key)

    # Small shapes consistent with a VQ-VAE decoder upsampling block:
    # batch=2, Cin=4, Cout=8, 8x8 -> 16x16 with kernel=4, stride=2, padding=1.
    N, Cin, Cout, H, W = 2, 4, 8, 8, 8
    K, stride, padding = 4, 2, 1

    x = jax.random.normal(k_x, (N, Cin, H, W), dtype=jnp.float32)
    weight = init_transpose_conv_block_params(k_w, Cin, Cout, K)

    out = transpose_conv_block_forward(x, weight, stride=stride, padding=padding)
    out = jax.block_until_ready(out)

    Ho = (H - 1) * stride - 2 * padding + K
    Wo = (W - 1) * stride - 2 * padding + K
    assert out.shape == (N, Cout, Ho, Wo), out.shape
    assert bool(jnp.all(jnp.isfinite(out)))
    assert bool(jnp.all(out >= 0.0))        # ReLU
    print("KERNEL_OK")
</pallas_src>

<mosaic_0001>
module attributes {stable_mosaic.version = 11 : i64} {
  func.func @_matmul_stats_kernel(%arg0: i32, %arg1: memref<256x128xbf16, #tpu.memory_space<vmem>>, %arg2: memref<128x128xbf16, #tpu.memory_space<vmem>>, %arg3: memref<256x128xf32, #tpu.memory_space<vmem>>, %arg4: memref<1x8x128xf32, #tpu.memory_space<vmem>>) attributes {dimension_semantics = [#tpu.dimension_semantics<parallel>], iteration_bounds = array<i64: 2>, scalar_prefetch = 0 : i64, scratch_operands = 0 : i64, tpu.core_type = #tpu.core_type<tc>, window_params = [{transform_indices = @transform_0, window_bounds = array<i64: 256, 128>}, {pipeline_mode = #tpu.pipeline_mode<synchronous>, transform_indices = @transform_1, window_bounds = array<i64: 128, 128>}, {transform_indices = @transform_2, window_bounds = array<i64: 256, 128>}, {transform_indices = @transform_3, window_bounds = array<i64: 1, 8, 128>}]} {
    %c0 = arith.constant 0 : index
    %c0_0 = arith.constant 0 : index
    %0 = vector.load %arg1[%c0, %c0_0] : memref<256x128xbf16, #tpu.memory_space<vmem>>, vector<256x128xbf16>
    %c0_1 = arith.constant 0 : index
    %c0_2 = arith.constant 0 : index
    %1 = vector.load %arg2[%c0_1, %c0_2] : memref<128x128xbf16, #tpu.memory_space<vmem>>, vector<128x128xbf16>
    %cst = arith.constant dense<0.000000e+00> : vector<256x128xf32>
    %2 = tpu.matmul %0, %1, %cst {dimension_numbers = #tpu.dot_dimension_numbers<[1], [0], [0], [1], [0, 0, 1, 1], [], []>} : vector<256x128xbf16>, vector<128x128xbf16>, vector<256x128xf32> -> vector<256x128xf32>
    %c0_3 = arith.constant 0 : index
    %c0_4 = arith.constant 0 : index
    %3 = vector.load %arg3[%c0_3, %c0_4] : memref<256x128xf32, #tpu.memory_space<vmem>>, vector<256x128xf32>
    tpu.vector_store %arg3[%c0_3, %c0_4], %2 {strides = array<i32>} : memref<256x128xf32, #tpu.memory_space<vmem>>, vector<256x128xf32>,
    %cst_5 = arith.constant dense<0.000000e+00> : vector<128xf32>
    %4 = vector.multi_reduction <add>, %2, %cst_5 [0] : vector<256x128xf32> to vector<128xf32>
    %5 = vector.shape_cast %4 : vector<128xf32> to vector<1x128xf32>
    %6 = arith.mulf %2, %2 : vector<256x128xf32>
    %cst_6 = arith.constant dense<0.000000e+00> : vector<128xf32>
    %7 = vector.multi_reduction <add>, %6, %cst_6 [0] : vector<256x128xf32> to vector<128xf32>
    %8 = vector.shape_cast %7 : vector<128xf32> to vector<1x128xf32>
    %cst_7 = arith.constant 0.000000e+00 : f32
    %9 = vector.broadcast %cst_7 : f32 to vector<6x128xf32>
    %10 = tpu.concatenate %5, %8, %9 in 0 : vector<1x128xf32>, vector<1x128xf32>, vector<6x128xf32> -> vector<8x128xf32>
    %c0_8 = arith.constant 0 : index
    %c0_9 = arith.constant 0 : index
    %c0_10 = arith.constant 0 : index
    %11 = vector.load %arg4[%c0_8, %c0_9, %c0_10] : memref<1x8x128xf32, #tpu.memory_space<vmem>>, vector<1x8x128xf32>
    %12 = vector.shape_cast %11 : vector<1x8x128xf32> to vector<8x128xf32>
    %13 = vector.shape_cast %10 : vector<8x128xf32> to vector<1x8x128xf32>
    tpu.vector_store %arg4[%c0_8, %c0_9, %c0_10], %13 {strides = array<i32>} : memref<1x8x128xf32, #tpu.memory_space<vmem>>, vector<1x8x128xf32>,
    return
  }
  func.func @transform_0(%arg0: i32) -> (i32, i32) {
    %c0_i32 = arith.constant 0 : i32
    %c0_i32_0 = arith.constant 0 : i32
    return %arg0, %c0_i32 : i32, i32
  }
  func.func @transform_1(%arg0: i32) -> (i32, i32) {
    %c0_i32 = arith.constant 0 : i32
    %c0_i32_0 = arith.constant 0 : i32
    %c0_i32_1 = arith.constant 0 : i32
    return %c0_i32, %c0_i32_0 : i32, i32
  }
  func.func @transform_2(%arg0: i32) -> (i32, i32) {
    %c0_i32 = arith.constant 0 : i32
    %c0_i32_0 = arith.constant 0 : i32
    return %arg0, %c0_i32 : i32, i32
  }
  func.func @transform_3(%arg0: i32) -> (i32, i32, i32) {
    %c0_i32 = arith.constant 0 : i32
    %c0_i32_0 = arith.constant 0 : i32
    %c0_i32_1 = arith.constant 0 : i32
    return %arg0, %c0_i32, %c0_i32_0 : i32, i32, i32
  }
}

</mosaic_0001>

<bundles_post_ra>
// kernel: tpu_custom_call.1
= control target key start
LH: loop header
LB: loop body
LE: loop exit
PB: predicated region body
PF: predicated region fallthrough
CT: control target
= control target key end

     0   :  { %9 = vsyncpa [#allocation3], 0  ;;  %s1623_s0 = inlined_call_operand.hbm [shape: bf16[512,128], index: 0, kind: input, shape index: {}]   ;;  %s1624_s1 = inlined_call_operand.hbm [shape: bf16[128,128], index: 1, kind: input, shape index: {}]   ;;  %s1625_s2 = inlined_call_operand.hbm [shape: f32[512,128], index: 2, kind: output, shape index: {0}]   ;;  %s1626_s3 = inlined_call_operand.hbm [shape: f32[2,8,128], index: 3, kind: output, shape index: {1}]  }
   0x1   :  { %11 = vsyncpa [#allocation3 + $0x1], 0 }
   0x2   :  { %12 = vsyncpa [#allocation6], 0 }
   0x3   :  { %13 = vsyncpa [#allocation4], 0 }
   0x4   :  { %15 = vsyncpa [#allocation4 + $0x1], 0 }
   0x5   :  { %16 = vsyncpa [#allocation9], 0 }
   0x6   :  { %18 = vsyncpa [#allocation9 + $0x1], 0  ;;  %s1266_s12 = smov 0   ;;  %s1268_s13 = smov 0  }
   0x7   :  { %s1270_s14 = smov 0   ;;  %s1272_s15 = smov 0  }
   0x8 LB: > { %s1287_s16 = sadd.s32 4294967295, %s1236_s15   ;;  %s861_s17 = sadd.s32 4294967294, %s1236_s15   ;;  %s1236_s15 = sphi %s1272_s15, %s1648_s15   ;;  %s1232_s14 = sphi %s1270_s14, %s1647_s14   ;;  %s1228_s13 = sphi %s1268_s13, %s1646_s13   ;;  %s1224_s12 = sphi %s1266_s12, %s1645_s12  }
   0x9   : > { %p44_p0 = scmp.ne.s32.totalorder %s1228_s13, %s1224_s12  ;;  %p1627_p1 = scmp.eq.s32.totalorder %s1287_s16, 0 }
   0xa   : > { %p95_p3 = scmp.eq.s32.totalorder %s861_s17, 1  ;;  %p862_p5 = scmp.ge.s32.totalorder %s1236_s15, 1 }
   0xb   : > { %p1296_p4 = por %p1627_p1, %p44_p0  ;;  %p128_p7 = scmp.lt.s32.totalorder %s1236_s15, 3 }
   0xc   : > { %p1301_p6 = por %p95_p3, %p44_p0  ;;  %s1238_s21 = smov [#allocation5]  }
   0xd   : > { %s1631_s18 = scalar_select %p1296_p4, 1, 0 }
   0xe   : > { %s1632_s19 = scalar_select %p1301_p6, 1, 0 }
   0xf   : > { %p1306_p8 = pnand %p862_p5, %p128_p7  ;;  %s140_s22 = sshll.u32 %s1238_s21, 4  ;;  %s141_s22 = int_to_ptr.vmem [resolvable:$true] %s140_s22 }
  0x10   : > { %s1320_s24 = sadd.s32 1, %s1236_s15   ;;  %s31_s25 = sadd.s32 1, %s1232_s14 }
  0x11   : > { %s1633_s20 = scalar_select %p1306_p8, 1, 0 }
  0x12   : > { %p1004_p9 = pneg %p1306_p8  ;;  %s28_s26 = ssub.s32 %s1236_s15, %s1320_s24 }
  0x13   : > { %s1095_s27 = scalar_lea.vmem %s141_s22, 1024  ;;  %p1103_p5 = scmp.lt.s32.totalorder %s141_s22, %s141_s22 }
  0x14   : > { %p1315_p11 = pnand %p1004_p9, %p1627_p1  ;;  %p1096_p13 = scmp.ne.s32.totalorder %s141_s22, %s1095_s27 }
  0x15   : > { %p1104_p7 = scmp.lt.s32.totalorder %s1095_s27, %s1095_s27 }
  0x16   : > { %p1086_p12 = pneg %p1315_p11 }
  0x17   : > { %p1105_p10 = por %p1104_p7, %p1103_p5 }
  0x18   : > { %p1098_p0 = pnand %p1096_p13, %p1086_p12 }
  0x1a   : > { %p1099_p3 = pneg %p1098_p0 }
  0x1c   : > { %p1106_p2 = pnand %p1105_p10, %p1099_p3 }
  0x1e   : > { %1109 = shalt.err (!%p1106_p2)
}
  0x1f   : > { %s1239_s28 = smov 64   ;;  %s1240_s29 = smov 4  }
  0x20   : > { %1007 = dma.hbm_to_vmem [thread:$0]  (!%p1315_p11), %s1624_s1, 1024, %s141_s22, [#allocation6], %s1239_s28, %s1239_s28, %s1240_s29  }
  0x21   : > { %p29_p2 = scmp.eq.s32.totalorder %s28_s26, 0  ;;  %p38_p9 = scmp.ne.s32.totalorder %s1232_s14, %s1228_s13 }
  0x22   : > { %p39_p10 = scmp.eq.s32.totalorder %s1236_s15, 0  ;;  %p1020_p12 = scmp.lt.s32.totalorder %s1236_s15, 2 }
  0x23   : > { %s1340_s5 = scalar_select %p29_p2, %s1232_s14, %s31_s25  }
  0x24   : > { %p40_p13 = por %p39_p10, %p38_p9  ;;  %p1635_p0 = scmp.eq.s32.totalorder %s1287_s16, 1 }
  0x25   : > { %s154_s7 = sand.u32 1, %s1232_s14   ;;  %s904_s8 = sshll.u32 %s1236_s15, 11 }
  0x26   : > { %p1344_p3 = por %p1635_p0, %p38_p9  ;;  %s865_s9 = sshll.u32 %s154_s7, 7 }
  0x27   : > { %s1353_s17 = scalar_lea.hbm %s1623_s0, %s904_s8  ;;  %s158_s21 = scalar_lea.vmem [#allocation2], %s865_s9 }
  0x28   : > { %s1636_s6 = scalar_select %p1344_p3, 1, 0 }
  0x29   : > { %s165_s22 = sshll.u32 %s158_s21, 4  ;;  %p1355_p11 = pnand %p1020_p12, %p40_p13  ;;  %s1359_s22 = int_to_ptr.vmem [resolvable:$true] %s165_s22 }
  0x2a   : > { %s1361_s25 = scalar_lea.sflag [#allocation3], %s154_s7  ;;  %s1110_s26 = scalar_lea.hbm %s1353_s17, 2048 }
  0x2b   : > { %p1111_p5 = scmp.ne.s32.totalorder %s1353_s17, %s1110_s26  ;;  %p1112_p7 = pneg %p1355_p11 }
  0x2c   : > { %s1115_s4 = scalar_lea.hbm %s1623_s0, 4096  ;;  %p1116_p10 = scmp.lt.s32.totalorder %s1353_s17, %s1623_s0 }
  0x2d   : > { %p1113_p2 = pnand %p1112_p7, %p1111_p5  ;;  %p1117_p12 = scmp.lt.s32.totalorder %s1115_s4, %s1110_s26 }
  0x2f   : > { %p1114_p9 = pneg %p1113_p2  ;;  %p1118_p13 = por %p1117_p12, %p1116_p10 }
  0x31   : > { %p1119_p0 = pnand %p1118_p13, %p1114_p9 }
  0x33   : > { %1122 = shalt.err (!%p1119_p0)
}
  0x34   : > { %s1123_s7 = scalar_lea.vmem %s1359_s22, 2048  ;;  %s1241_s10 = smov [#allocation2]  }
  0x35   : > { %p1124_p1 = scmp.ne.s32.totalorder %s1359_s22, %s1123_s7  ;;  %s1128_s11 = sshll.u32 %s1241_s10, 4  ;;  %s1129_s11 = int_to_ptr.vmem [resolvable:$false] %s1128_s11 }
  0x36   : > { %s1130_s21 = scalar_lea.vmem %s1129_s11, 4096  ;;  %p1131_p2 = scmp.lt.s32.totalorder %s1359_s22, %s1129_s11 }
  0x37   : > { %p1126_p6 = pnand %p1124_p1, %p1112_p7  ;;  %p1132_p3 = scmp.lt.s32.totalorder %s1130_s21, %s1123_s7 }
  0x39   : > { %p1127_p5 = pneg %p1126_p6  ;;  %p1133_p4 = por %p1132_p3, %p1131_p2 }
  0x3b   : > { %p1134_p8 = pnand %p1133_p4, %p1127_p5 }
  0x3d   : > { %1137 = shalt.err (!%p1134_p8)
}
  0x3e   : > { %1011 = dma.hbm_to_vmem [thread:$0]  (!%p1355_p11), %s1353_s17, 2048, %s1359_s22, %s1361_s25, %s1239_s28, %s1239_s28, %s1240_s29  }
  0x3f   : > { %p1638_p1 = scmp.ne.s32.totalorder %s1633_s20, 0 }
  0x40   : > { %s1388_s26 = sand.u32 (!%p1638_p1), 1, %s1228_s13   ;;  %p1639_p4 = scmp.ne.s32.totalorder (!%p1638_p1), %s1631_s18, 0 }
  0x41   : > { %177 = sbr.rel (%p1638_p1) target bundleno = 407 (0x197), region = 28  ;;  %s869_s27 = sshll.u32 (!%p1638_p1), %s1388_s26, 7 }
  0x42   : > { %s180_s30 = scalar_lea.sflag (!%p1638_p1), [#allocation3], %s1388_s26  ;;  %s1392_s4 = scalar_lea.vmem (!%p1638_p1), [#allocation2], %s869_s27 }
  0x46   : > { %1207 = dma.done.wait (%p1639_p4), %s180_s30, 2048  }
  0x47   : > { %1209 = vsyncadd (%p1639_p4), %s180_s30, 4294965248  ;;  %p1640_p6 = scmp.eq.s32.totalorder %s1287_s16, 0 }
  0x49   : > { %1211 = dma.done.wait (%p1640_p6), [#allocation6], 1024   ;;  %p1641_p8 = pmov %p1640_p6 }
  0x4a   : > { %v1060_v0 = vld [vmem:[#allocation5 + $0x38] sm:$0xff]   ;;  %v1061_v1 = vld [vmem:[#allocation5 + $0x30] sm:$0xff]   ;;  %v1062_v2 = vld [vmem:[#allocation5 + $0x28] sm:$0xff]   ;;  %s871_s18 = sshll.u32 %s1388_s26, 8  ;;  %s905_s28 = sshll.u32 %s1287_s16, 12 }
  0x4b   : > { %1213 = vsyncadd (%p1641_p8), [#allocation6], 4294966272  ;;  %930 = vmatprep.subr.bf16.mxu0 %v1060_v0  ;;  %978 = vmatprep.subr.bf16.mxu1 %v1060_v0  ;;  %v1063_v3 = vld [vmem:[#allocation5 + $0x20] sm:$0xff]   ;;  %v1064_v5 = vld [vmem:[#allocation5 + $0x18] sm:$0xff]   ;;  %s1421_s20 = scalar_lea.vmem [#allocation7], %s871_s18  ;;  %s1498_s23 = scalar_lea.hbm %s1625_s2, %s905_s28 }
  0x4c   : > { %931 = vmatpush3.bf16.msra.mxu0 %v1060_v0  ;;  %986 = vmatpush3.bf16.msra.mxu1 %v1060_v0  ;;  %v1068_v4 = vld [vmem:[%s1392_s4] sm:$0xff]   ;;  %v1065_v6 = vld [vmem:[#allocation5 + $0x10] sm:$0xff]   ;;  %v1066_v8 = vld [vmem:[#allocation5 + $0x8] sm:$0xff]   ;;  %s733_s29 = sshll.u32 %s1421_s20, 4  ;;  %s715_s25 = scalar_lea.sflag [#allocation4], %s1388_s26  ;;  %s1500_s29 = int_to_ptr.vmem [resolvable:$true] %s733_s29 }
  0x4d   : > { %932 = vmatprep.subr.bf16.mxu0 %v1061_v1  ;;  %979 = vmatprep.subr.bf16.mxu1 %v1061_v1  ;;  %v1076_v7 = vld [vmem:[%s1392_s4 + $0x40] sm:$0xff]   ;;  %v1069_v10 = vld [vmem:[%s1392_s4 + $0x8] sm:$0xff]   ;;  %v1070_v12 = vld [vmem:[%s1392_s4 + $0x10] sm:$0xff]   ;;  %s1138_s8 = scalar_lea.vmem %s1500_s29, 4096  ;;  %p1642_p11 = scmp.ne.s32.totalorder %s1636_s6, 0 }
  0x4e   : > { %946 = vmatprep.mubr.bf16.mxu0 %v1068_v4  ;;  %962 = vmatprep.mubr.bf16.mxu1 %v1076_v7  ;;  %v1067_v9 = vld [vmem:[#allocation5] sm:$0xff]   ;;  %v1077_v11 = vld [vmem:[%s1392_s4 + $0x48] sm:$0xff]   ;;  %v1078_v13 = vld [vmem:[%s1392_s4 + $0x50] sm:$0xff]   ;;  %p1139_p3 = scmp.ne.s32.totalorder %s1500_s29, %s1138_s8  ;;  %s1242_s9 = smov [#allocation7]  }
  0x4f   : > { %v1071_v14 = vld [vmem:[%s1392_s4 + $0x18] sm:$0xff]   ;;  %v1072_v16 = vld [vmem:[%s1392_s4 + $0x20] sm:$0xff]   ;;  %v1073_v18 = vld [vmem:[%s1392_s4 + $0x28] sm:$0xff]   ;;  %s1142_s7 = sshll.u32 %s1242_s9, 4  ;;  %s1143_s7 = int_to_ptr.vmem [resolvable:$false] %s1142_s7 }
  0x50   : > { %933 = vmatpush3.bf16.msra.mxu0 %v1061_v1  ;;  %987 = vmatpush3.bf16.msra.mxu1 %v1061_v1  ;;  %v1079_v15 = vld [vmem:[%s1392_s4 + $0x58] sm:$0xff]   ;;  %v1080_v17 = vld [vmem:[%s1392_s4 + $0x60] sm:$0xff]   ;;  %v1081_v19 = vld [vmem:[%s1392_s4 + $0x68] sm:$0xff]   ;;  %p1140_p7 = pnand %p1139_p3, %p1642_p11  ;;  %s1144_s10 = scalar_lea.vmem %s1143_s7, 8192 }
  0x51   : > { %934 = vmatprep.subr.bf16.mxu0 %v1062_v2  ;;  %980 = vmatprep.subr.bf16.mxu1 %v1062_v2  ;;  %v1074_v20 = vld [vmem:[%s1392_s4 + $0x30] sm:$0xff]   ;;  %v1075_v22 = vld [vmem:[%s1392_s4 + $0x38] sm:$0xff]   ;;  %p1145_p10 = scmp.lt.s32.totalorder %s1500_s29, %s1143_s7  ;;  %p1146_p12 = scmp.lt.s32.totalorder %s1144_s10, %s1138_s8 }
  0x52   : > { %v1082_v21 = vld [vmem:[%s1392_s4 + $0x70] sm:$0xff]   ;;  %v1083_v23 = vld [vmem:[%s1392_s4 + $0x78] sm:$0xff]   ;;  %p1141_p9 = pneg %p1140_p7 }
  0x53   : > { %p1147_p13 = por %p1146_p12, %p1145_p10 }
  0x54   : > { %935 = vmatpush3.bf16.msra.mxu0 %v1062_v2  ;;  %988 = vmatpush3.bf16.msra.mxu1 %v1062_v2 }
  0x55   : > { %936 = vmatprep.subr.bf16.mxu0 %v1063_v3  ;;  %981 = vmatprep.subr.bf16.mxu1 %v1063_v3  ;;  %p1148_p0 = pnand %p1147_p13, %p1141_p9 }
  0x58   : > { %937 = vmatpush3.bf16.msra.mxu0 %v1063_v3  ;;  %989 = vmatpush3.bf16.msra.mxu1 %v1063_v3 }
  0x59   : > { %938 = vmatprep.subr.bf16.mxu0 %v1064_v5  ;;  %982 = vmatprep.subr.bf16.mxu1 %v1064_v5 }
  0x5c   : > { %939 = vmatpush3.bf16.msra.mxu0 %v1064_v5  ;;  %990 = vmatpush3.bf16.msra.mxu1 %v1064_v5 }
  0x5d   : > { %940 = vmatprep.subr.bf16.mxu0 %v1065_v6  ;;  %983 = vmatprep.subr.bf16.mxu1 %v1065_v6 }
  0x60   : > { %941 = vmatpush3.bf16.msra.mxu0 %v1065_v6  ;;  %991 = vmatpush3.bf16.msra.mxu1 %v1065_v6 }
  0x61   : > { %942 = vmatprep.subr.bf16.mxu0 %v1066_v8  ;;  %984 = vmatprep.subr.bf16.mxu1 %v1066_v8 }
  0x64   : > { %943 = vmatpush3.bf16.msra.mxu0 %v1066_v8  ;;  %992 = vmatpush3.bf16.msra.mxu1 %v1066_v8 }
  0x65   : > { %944 = vmatprep.subr.bf16.mxu0 %v1067_v9  ;;  %985 = vmatprep.subr.bf16.mxu1 %v1067_v9 }
  0x68   : > { %945 = vmatpush3.bf16.msra.mxu0 %v1067_v9  ;;  %993 = vmatpush3.bf16.msra.mxu1 %v1067_v9 }
  0x6b   : > { %947 = vmatmul.mubr.bf16.vlgmr.msra.gmra.mxu0 %v1069_v10  ;;  %963 = vmatmul.mubr.bf16.vlgmr.msra.gmra.mxu1 %v1077_v11 }
  0x6c   : > { %950 = vmatprep.mubr.bf16.mxu0 %v1070_v12  ;;  %966 = vmatprep.mubr.bf16.mxu1 %v1078_v13 }
  0x73   : > { %951 = vmatmul.mubr.bf16.gmra.mxu0 %v1071_v14  ;;  %967 = vmatmul.mubr.bf16.gmra.mxu1 %v1079_v15 }
  0x74   : > { %954 = vmatprep.mubr.bf16.mxu0 %v1072_v16  ;;  %970 = vmatprep.mubr.bf16.mxu1 %v1080_v17 }
  0x7b   : > { %955 = vmatmul.mubr.bf16.gmra.mxu0 %v1073_v18  ;;  %971 = vmatmul.mubr.bf16.gmra.mxu1 %v1081_v19 }
  0x7c   : > { %958 = vmatprep.mubr.bf16.mxu0 %v1074_v20  ;;  %974 = vmatprep.mubr.bf16.mxu1 %v1082_v21 }
  0x83   : > { %959 = vmatmul.mubr.bf16.gmra.mxu0 %v1075_v22  ;;  %975 = vmatmul.mubr.bf16.gmra.mxu1 %v1083_v23 }
 0x12b   : > { %v948_v24 = vpop.f32.mrf.mxu0  ;;  %v1419_v25 = vpop.f32.mrf.mxu1 }
 0x12c   : > { %573 = vst [vmem:[%s1421_s20 + $0x10] sm:$0xff] %v948_v24  ;;  %589 = vst [vmem:[%s1421_s20 + $0x90] sm:$0xff] %v1419_v25  ;;  %v642_v37 = vmul.f32 %v948_v24, %v948_v24 }
 0x12d   : > { %v444_v26 = vpop.f32.mrf.mxu0  ;;  %v1426_v27 = vpop.f32.mrf.mxu1 }
 0x12e   : > { %571 = vst [vmem:[%s1421_s20] sm:$0xff] %v444_v26  ;;  %587 = vst [vmem:[%s1421_s20 + $0x80] sm:$0xff] %v1426_v27  ;;  %v640_v32 = vmul.f32 %v444_v26, %v444_v26 }
 0x12f   : > { %v949_v28 = vpop.f32.mrf.mxu0  ;;  %v1431_v29 = vpop.f32.mrf.mxu1 }
 0x130   : > { %574 = vst [vmem:[%s1421_s20 + $0x18] sm:$0xff] %v949_v28  ;;  %590 = vst [vmem:[%s1421_s20 + $0x98] sm:$0xff] %v1431_v29  ;;  %v643_v42 = vmul.f32 %v949_v28, %v949_v28 }
 0x131   : > { %v447_v30 = vpop.f32.mrf.mxu0  ;;  %v1436_v31 = vpop.f32.mrf.mxu1 }
 0x132   : > { %572 = vst [vmem:[%s1421_s20 + $0x8] sm:$0xff] %v447_v30  ;;  %v603_v33 = vadd.f32 %v447_v30, %v444_v26  ;;  %v641_v34 = vmul.f32 %v447_v30, %v447_v30  ;;  %588 = vst [vmem:[%s1421_s20 + $0x88] sm:$0xff] %v1436_v31 }
 0x133   : > { %v952_v35 = vpop.f32.mrf.mxu0  ;;  %v1441_v36 = vpop.f32.mrf.mxu1 }
 0x134   : > { %v604_v38 = vadd.f32 %v948_v24, %v603_v33  ;;  %v672_v39 = vadd.f32 %v641_v34, %v640_v32  ;;  %577 = vst [vmem:[%s1421_s20 + $0x30] sm:$0xff] %v952_v35  ;;  %593 = vst [vmem:[%s1421_s20 + $0xb0] sm:$0xff] %v1441_v36  ;;  %v646_v57 = vmul.f32 %v952_v35, %v952_v35 }
 0x135   : > { %v460_v40 = vpop.f32.mrf.mxu0  ;;  %v1446_v41 = vpop.f32.mrf.mxu1 }
 0x136   : > { %v673_v43 = vadd.f32 %v672_v39, %v642_v37  ;;  %575 = vst [vmem:[%s1421_s20 + $0x20] sm:$0xff] %v460_v40  ;;  %v605_v44 = vadd.f32 %v949_v28, %v604_v38  ;;  %591 = vst [vmem:[%s1421_s20 + $0xa0] sm:$0xff] %v1446_v41  ;;  %v644_v48 = vmul.f32 %v460_v40, %v460_v40 }
 0x137   : > { %v953_v45 = vpop.f32.mrf.mxu0  ;;  %v1451_v46 = vpop.f32.mrf.mxu1 }
 0x138   : > { %v606_v47 = vadd.f32 %v605_v44, %v460_v40  ;;  %v674_v49 = vadd.f32 %v673_v43, %v643_v42  ;;  %578 = vst [vmem:[%s1421_s20 + $0x38] sm:$0xff] %v953_v45  ;;  %594 = vst [vmem:[%s1421_s20 + $0xb8] sm:$0xff] %v1451_v46  ;;  %v647_v62 = vmul.f32 %v953_v45, %v953_v45 }
 0x139   : > { %v463_v50 = vpop.f32.mrf.mxu0  ;;  %v1456_v51 = vpop.f32.mrf.mxu1 }
 0x13a   : > { %v675_v52 = vadd.f32 %v674_v49, %v644_v48  ;;  %576 = vst [vmem:[%s1421_s20 + $0x28] sm:$0xff] %v463_v50  ;;  %v607_v53 = vadd.f32 %v606_v47, %v463_v50  ;;  %v645_v54 = vmul.f32 %v463_v50, %v463_v50  ;;  %592 = vst [vmem:[%s1421_s20 + $0xa8] sm:$0xff] %v1456_v51 }
 0x13b   : > { %v956_v55 = vpop.f32.mrf.mxu0  ;;  %v1461_v56 = vpop.f32.mrf.mxu1 }
 0x13c   : > { %v608_v58 = vadd.f32 %v952_v35, %v607_v53  ;;  %v676_v59 = vadd.f32 %v675_v52, %v645_v54  ;;  %581 = vst [vmem:[%s1421_s20 + $0x50] sm:$0xff] %v956_v55  ;;  %597 = vst [vmem:[%s1421_s20 + $0xd0] sm:$0xff] %v1461_v56  ;;  %v650_v13 = vmul.f32 %v956_v55, %v956_v55 }
 0x13d   : > { %v476_v60 = vpop.f32.mrf.mxu0  ;;  %v1466_v61 = vpop.f32.mrf.mxu1 }
 0x13e   : > { %v677_v63 = vadd.f32 %v676_v59, %v646_v57  ;;  %579 = vst [vmem:[%s1421_s20 + $0x40] sm:$0xff] %v476_v60  ;;  %v609_v0 = vadd.f32 %v953_v45, %v608_v58  ;;  %595 = vst [vmem:[%s1421_s20 + $0xc0] sm:$0xff] %v1466_v61  ;;  %v648_v4 = vmul.f32 %v476_v60, %v476_v60 }
 0x13f   : > { %v957_v1 = vpop.f32.mrf.mxu0  ;;  %v1471_v2 = vpop.f32.mrf.mxu1 }
 0x140   : > { %v610_v3 = vadd.f32 %v609_v0, %v476_v60  ;;  %v678_v5 = vadd.f32 %v677_v63, %v647_v62  ;;  %582 = vst [vmem:[%s1421_s20 + $0x58] sm:$0xff] %v957_v1  ;;  %598 = vst [vmem:[%s1421_s20 + $0xd8] sm:$0xff] %v1471_v2  ;;  %v651_v18 = vmul.f32 %v957_v1, %v957_v1 }
 0x141   : > { %v479_v6 = vpop.f32.mrf.mxu0  ;;  %v1476_v7 = vpop.f32.mrf.mxu1 }
 0x142   : > { %v679_v8 = vadd.f32 %v678_v5, %v648_v4  ;;  %580 = vst [vmem:[%s1421_s20 + $0x48] sm:$0xff] %v479_v6  ;;  %v611_v9 = vadd.f32 %v610_v3, %v479_v6  ;;  %v649_v10 = vmul.f32 %v479_v6, %v479_v6  ;;  %596 = vst [vmem:[%s1421_s20 + $0xc8] sm:$0xff] %v1476_v7 }
 0x143   : > { %v960_v11 = vpop.f32.mrf.mxu0  ;;  %v1481_v12 = vpop.f32.mrf.mxu1 }
 0x144   : > { %v612_v14 = vadd.f32 %v956_v55, %v611_v9  ;;  %v680_v15 = vadd.f32 %v679_v8, %v649_v10  ;;  %585 = vst [vmem:[%s1421_s20 + $0x70] sm:$0xff] %v960_v11  ;;  %601 = vst [vmem:[%s1421_s20 + $0xf0] sm:$0xff] %v1481_v12 }
 0x145   : > { %v492_v16 = vpop.f32.mrf.mxu0  ;;  %v1488_v17 = vpop.f32.mrf.mxu1 }
 0x146   : > { %v681_v19 = vadd.f32 %v680_v15, %v650_v13  ;;  %583 = vst [vmem:[%s1421_s20 + $0x60] sm:$0xff] %v492_v16  ;;  %v613_v20 = vadd.f32 %v957_v1, %v612_v14  ;;  %599 = vst [vmem:[%s1421_s20 + $0xe0] sm:$0xff] %v1488_v17  ;;  %v652_v24 = vmul.f32 %v492_v16, %v492_v16 }
 0x147   : > { %v961_v21 = vpop.f32.mrf.mxu0  ;;  %v1493_v22 = vpop.f32.mrf.mxu1 }
 0x148   : > { %v614_v23 = vadd.f32 %v613_v20, %v492_v16  ;;  %v682_v26 = vadd.f32 %v681_v19, %v651_v18  ;;  %586 = vst [vmem:[%s1421_s20 + $0x78] sm:$0xff] %v961_v21  ;;  %602 = vst [vmem:[%s1421_s20 + $0xf8] sm:$0xff] %v1493_v22 }
 0x149   : > { %v495_v28 = vpop.f32.mrf.mxu0  ;;  %v1505_v30 = vpop.f32.mrf.mxu1 }
 0x14a   : > { %v683_v32 = vadd.f32 %v682_v26, %v652_v24  ;;  %584 = vst [vmem:[%s1421_s20 + $0x68] sm:$0xff] %v495_v28  ;;  %v615_v33 = vadd.f32 %v614_v23, %v495_v28  ;;  %v653_v34 = vmul.f32 %v495_v28, %v495_v28  ;;  %600 = vst [vmem:[%s1421_s20 + $0xe8] sm:$0xff] %v1505_v30 }
 0x14b   : > { %1151 = shalt.err (!%p1148_p0)
}
 0x14c   : > { %s1152_s11 = scalar_lea.hbm %s1498_s23, 4096  ;;  %s1156_s30 = scalar_lea.hbm %s1625_s2, 8192 }
 0x14d   : > { %p1153_p5 = scmp.ne.s32.totalorder %s1498_s23, %s1152_s11  ;;  %p1157_p4 = scmp.lt.s32.totalorder %s1498_s23, %s1625_s2 }
 0x14e   : > { %p1158_p6 = scmp.lt.s32.totalorder %s1156_s30, %s1152_s11 }
 0x14f   : > { %p1154_p2 = pnand %p1153_p5, %p1642_p11 }
 0x150   : > { %p1159_p8 = por %p1158_p6, %p1157_p4 }
 0x151   : > { %p1155_p1 = pneg %p1154_p2 }
 0x153   : > { %p1160_p3 = pnand %p1159_p8, %p1155_p1 }
 0x155   : > { %1163 = shalt.err (!%p1160_p3)
}
 0x156   : > { %s1243_s20 = smov 128   ;;  %s1244_s28 = smov 8   ;;  %v654_v35 = vmul.f32 %v960_v11, %v960_v11  ;;  %v616_v37 = vadd.f32 %v960_v11, %v615_v33  ;;  %v684_v38 = vadd.f32 %v683_v32, %v653_v34  ;;  %v655_v39 = vmul.f32 %v961_v21, %v961_v21 }
 0x157   : > { %1000 = dma.vmem_to_hbm [thread:$0]  (%p1642_p11), %s1500_s29, 4096, %s1498_s23, %s715_s25, %s1243_s20, %s1243_s20, %s1244_s28   ;;  %v656_v43 = vmul.f32 %v1426_v27, %v1426_v27  ;;  %v657_v48 = vmul.f32 %v1436_v31, %v1436_v31  ;;  %v658_v50 = vmul.f32 %v1419_v25, %v1419_v25  ;;  %v659_v54 = vmul.f32 %v1431_v29, %v1431_v29 }
 0x158   : > { %v617_v40 = vadd.f32 %v961_v21, %v616_v37  ;;  %v685_v42 = vadd.f32 %v684_v38, %v654_v35  ;;  %v660_v58 = vmul.f32 %v1446_v41, %v1446_v41  ;;  %v661_v62 = vmul.f32 %v1456_v51, %v1456_v51  ;;  %s872_s29 = sshll.u32 %s1388_s26, 3  ;;  %s901_s17 = sshll.u32 %s1287_s16, 7 }
 0x159   : > { %v664_v4 = vmul.f32 %v1466_v61, %v1466_v61  ;;  %v665_v8 = vmul.f32 %v1476_v7, %v1476_v7  ;;  %v668_v14 = vmul.f32 %v1488_v17, %v1488_v17  ;;  %v670_v18 = vmul.f32 %v1481_v12, %v1481_v12  ;;  %s214_s22 = scalar_lea.vmem [#allocation8], %s872_s29  ;;  %s1586_s9 = scalar_lea.hbm %s1626_s3, %s901_s17 }
 0x15a   : > { %v686_v44 = vadd.f32 %v685_v42, %v655_v39  ;;  %v618_v45 = vadd.f32 %v617_v40, %v1426_v27  ;;  %vm709_vm0 = vcmask 1040384   ;;  %s749_s23 = sshll.u32 %s214_s22, 4  ;;  %vm711_vm1 = vcmask 1041408   ;;  %s720_s7 = scalar_lea.sflag [#allocation9], %s1388_s26  ;;  %s750_s23 = int_to_ptr.vmem [resolvable:$true] %s749_s23 }
 0x15b   : > { %s1164_s10 = scalar_lea.vmem %s750_s23, 128  ;;  %s1245_s16 = smov [#allocation8]  }
 0x15c   : > { %v619_v47 = vadd.f32 %v618_v45, %v1436_v31  ;;  %v687_v49 = vadd.f32 %v686_v44, %v656_v43  ;;  %p1165_p7 = scmp.ne.s32.totalorder %s750_s23, %s1164_s10  ;;  %s1168_s11 = sshll.u32 %s1245_s16, 4  ;;  %s1169_s11 = int_to_ptr.vmem [resolvable:$false] %s1168_s11 }
 0x15d   : > { %s1170_s21 = scalar_lea.vmem %s1169_s11, 256  ;;  %p1171_p12 = scmp.lt.s32.totalorder %s750_s23, %s1169_s11 }
 0x15e   : > { %v620_v52 = vadd.f32 %v1419_v25, %v619_v47  ;;  %v688_v53 = vadd.f32 %v687_v49, %v657_v48  ;;  %v662_v25 = vmul.f32 %v1441_v36, %v1441_v36  ;;  %p1166_p9 = pnand %p1165_p7, %p1642_p11  ;;  %p1172_p13 = scmp.lt.s32.totalorder %s1170_s21, %s1164_s10 }
 0x160   : > { %v689_v55 = vadd.f32 %v688_v53, %v658_v50  ;;  %v621_v57 = vadd.f32 %v1431_v29, %v620_v52  ;;  %v663_v29 = vmul.f32 %v1451_v46, %v1451_v46  ;;  %p1167_p10 = pneg %p1166_p9  ;;  %p1173_p0 = por %p1172_p13, %p1171_p12 }
 0x162   : > { %v622_v27 = vadd.f32 %v621_v57, %v1446_v41  ;;  %v690_v59 = vadd.f32 %v689_v55, %v659_v54  ;;  %p1174_p5 = pnand %p1173_p0, %p1167_p10 }
 0x164   : > { %v691_v31 = vadd.f32 %v690_v59, %v660_v58  ;;  %v623_v60 = vadd.f32 %v622_v27, %v1456_v51 }
 0x166   : > { %v624_v63 = vadd.f32 %v1441_v36, %v623_v60  ;;  %v692_v0 = vadd.f32 %v691_v31, %v661_v62  ;;  %v666_v36 = vmul.f32 %v1461_v56, %v1461_v56 }
 0x168   : > { %v693_v1 = vadd.f32 %v692_v0, %v662_v25  ;;  %v625_v3 = vadd.f32 %v1451_v46, %v624_v63  ;;  %v667_v46 = vmul.f32 %v1471_v2, %v1471_v2 }
 0x16a   : > { %v626_v41 = vadd.f32 %v625_v3, %v1466_v61  ;;  %v694_v5 = vadd.f32 %v693_v1, %v663_v29 }
 0x16c   : > { %v695_v6 = vadd.f32 %v694_v5, %v664_v4  ;;  %v627_v51 = vadd.f32 %v626_v41, %v1476_v7 }
 0x16e   : > { %v628_v9 = vadd.f32 %v1461_v56, %v627_v51  ;;  %v696_v10 = vadd.f32 %v695_v6, %v665_v8  ;;  %v669_v56 = vmul.f32 %v1505_v30, %v1505_v30 }
 0x170   : > { %v697_v11 = vadd.f32 %v696_v10, %v666_v36  ;;  %v629_v13 = vadd.f32 %v1471_v2, %v628_v9  ;;  %v671_v2 = vmul.f32 %v1493_v22, %v1493_v22 }
 0x172   : > { %v630_v61 = vadd.f32 %v629_v13, %v1488_v17  ;;  %v698_v15 = vadd.f32 %v697_v11, %v667_v46 }
 0x174   : > { %v699_v7 = vadd.f32 %v698_v15, %v668_v14  ;;  %v631_v16 = vadd.f32 %v630_v61, %v1505_v30 }
 0x176   : > { %v632_v19 = vadd.f32 %v1481_v12, %v631_v16  ;;  %v700_v20 = vadd.f32 %v699_v7, %v669_v56 }
 0x178   : > { %v633_v17 = vadd.f32 %v1493_v22, %v632_v19  ;;  %v701_v21 = vadd.f32 %v700_v20, %v670_v18 }
 0x17a   : > { %v634_v23 = vrot.slane %v633_v17, 4  ;;  %v702_v24 = vadd.f32 %v701_v21, %v671_v2 }
 0x17c   : > { %v635_v26 = vadd.f32 %v634_v23, %v633_v17  ;;  %v703_v28 = vrot.slane %v702_v24, 4 }
 0x17e   : > { %v636_v32 = vrot.slane %v635_v26, 2  ;;  %v704_v33 = vadd.f32 %v703_v28, %v702_v24 }
 0x180   : > { %v637_v30 = vadd.f32 %v636_v32, %v635_v26  ;;  %v705_v34 = vrot.slane %v704_v33, 2 }
 0x182   : > { %v638_v35 = vrot.slane %v637_v30, 1  ;;  %v706_v12 = vadd.f32 %v705_v34, %v704_v33 }
 0x184   : > { %v707_v37 = vrot.slane %v706_v12, 1  ;;  %v639_v22 = vadd.f32 %v638_v35, %v637_v30 }
 0x186   : > { %v708_v38 = vadd.f32 %v707_v37, %v706_v12 }
 0x188   : > { %v710_v39 = vsel %vm709_vm0, %v639_v22, %v708_v38 }
 0x189   : > { %v712_v40 = vsel %vm711_vm1, %v710_v39, 0.0 }
 0x18a   : > { %713 = vst [vmem:[%s214_s22] sm:$0xff] %v712_v40 }
 0x18b   : > { %1177 = shalt.err (!%p1174_p5)
}
 0x18c   : > { %s1178_s27 = scalar_lea.hbm %s1586_s9, 128  ;;  %s1182_s4 = scalar_lea.hbm %s1626_s3, 256 }
 0x18d   : > { %p1179_p2 = scmp.ne.s32.totalorder %s1586_s9, %s1178_s27  ;;  %p1183_p6 = scmp.lt.s32.totalorder %s1586_s9, %s1626_s3 }
 0x18e   : > { %p1184_p8 = scmp.lt.s32.totalorder %s1182_s4, %s1178_s27 }
 0x18f   : > { %p1180_p1 = pnand %p1179_p2, %p1642_p11 }
 0x190   : > { %p1185_p3 = por %p1184_p8, %p1183_p6 }
 0x191   : > { %p1181_p4 = pneg %p1180_p1 }
 0x193   : > { %p1186_p7 = pnand %p1185_p3, %p1181_p4 }
 0x195   : > { %1189 = shalt.err (!%p1186_p7)
}
 0x196   : > { %1001 = dma.vmem_to_hbm [thread:$0]  (%p1642_p11), %s750_s23, 128, %s1586_s9, %s720_s7  }
 0x197 PF: > { %s761_s28 = sand.u32 1, %s1224_s12   ;;  %p1643_p9 = scmp.ne.s32.totalorder %s1632_s19, 0 }
 0x198   : > { %p1644_p10 = scmp.ge.s32.totalorder %s1236_s15, 2  ;;  %s762_s29 = scalar_lea.sflag [#allocation4], %s761_s28 }
 0x19a   : > { %p1013_p12 = pnand %p1644_p10, %p1643_p9 }
 0x19c   : > { %p1014_p13 = pneg %p1013_p12 }
 0x19e   : > { %1215 = dma.done.wait (%p1014_p13), %s762_s29, 4096  }
 0x19f   : > { %1217 = vsyncadd (%p1014_p13), %s762_s29, 4294963200  ;;  %s771_s17 = scalar_lea.sflag [#allocation9], %s761_s28 }
 0x1a0   : > { %1219 = dma.done.wait (%p1014_p13), %s771_s17, 128  }
 0x1a1   : > { %1221 = vsyncadd (%p1014_p13), %s771_s17, 4294967168  ;;  %p21_p11 = scmp.ge.s32.totalorder %s1320_s24, 4   ;;  %s1645_s12 = smov %s1228_s13 }
 0x1a2   : > { %s1646_s13 = smov %s1232_s14  ;;  %s1647_s14 = smov %s1340_s5 }
 0x1a3   : > { %s1648_s15 = smov %s1320_s24  ;;  %23 = sbr.rel (!%p21_p11) target bundleno = 8 (0x8), region = 94 }
 0x1a8   :  { %776 = vsyncpa [#allocation3], 1 }
 0x1a9   :  { %778 = vsyncpa [#allocation3 + $0x1], 1 }
 0x1aa   :  { %779 = vsyncpa [#allocation6], 1 }
 0x1ab   :  { %780 = vsyncpa [#allocation4], 1 }
 0x1ac   :  { %782 = vsyncpa [#allocation4 + $0x1], 1 }
 0x1ad   :  { %783 = vsyncpa [#allocation9], 1 }
 0x1ae   :  { %785 = vsyncpa [#allocation9 + $0x1], 1 }

</bundles_post_ra>
